<compile_context>
chip_gen: v5e
topology: v5e:2x2
jax: 0.10.0
libtpu: 0.0.40
codegen_flags: <defaults>
</compile_context>

<pallas_src>
import jax
import jax.numpy as jnp
from jax.experimental import pallas as pl
from jax.experimental.pallas import tpu as pltpu

STATE_SIZE = 16
ACTION_SIZE = 4
HIDDEN = 128
MAX_TILE_B = 1024      # batch tile upper bound (per review: 1024-2048)
SUBLANE = 16           # row alignment (bf16 packs 16 rows per sublane tile)


def _round_up(n, m):
    return ((n + m - 1) // m) * m


def nash_dqn_kernel(x_ref, w1_ref, b1_ref, w2_ref, b2_ref, w3_ref, b3_ref, o_ref):
    # Cast x to bf16 in-kernel (free VPU filler); all matmuls accumulate in f32.
    x = x_ref[...].astype(jnp.bfloat16)
    # fc1 + relu (f32 epilogue)
    h1 = jnp.dot(x, w1_ref[...], preferred_element_type=jnp.float32)
    h1 = jnp.maximum(h1 + b1_ref[...], 0.0)
    # fc2 + relu
    h2 = jnp.dot(h1.astype(jnp.bfloat16), w2_ref[...],
                 preferred_element_type=jnp.float32)
    h2 = jnp.maximum(h2 + b2_ref[...], 0.0)
    # fc3 (no activation); narrow (tile_b, action_size) store -> minimal writeback
    out = jnp.dot(h2.astype(jnp.bfloat16), w3_ref[...],
                  preferred_element_type=jnp.float32)
    o_ref[...] = (out + b3_ref[...]).astype(o_ref.dtype)


def prepare_params(params):
    """One-time parameter prep (hoisted out of the per-call path)."""
    w1, b1, w2, b2, w3, b3 = params
    return (
        w1.astype(jnp.bfloat16), jnp.asarray(b1, jnp.float32).reshape(1, -1),
        w2.astype(jnp.bfloat16), jnp.asarray(b2, jnp.float32).reshape(1, -1),
        w3.astype(jnp.bfloat16), jnp.asarray(b3, jnp.float32).reshape(1, -1),
    )


def nash_dqn_forward(x, prepared_params, *, tile_b=None):
    """x: [B, state_size] f32; prepared_params from prepare_params()."""
    w1, b1, w2, b2, w3, b3 = prepared_params
    B, state_size = x.shape
    action_size = w3.shape[1]

    # Batch tile: large for throughput, but aim for >=2 grid steps (v7x's two
    # TensorCores shard the "parallel" batch axis); 16-row aligned.
    if tile_b is None:
        tile_b = min(MAX_TILE_B, max(SUBLANE, _round_up((B + 1) // 2, SUBLANE)))
    tile_b = _round_up(tile_b, SUBLANE)
    b_pad = _round_up(max(B, 1), tile_b)

    # Single pad op only when needed; x stays f32 (cast to bf16 in-kernel).
    x_in = x if b_pad == B else jnp.pad(x, ((0, b_pad - B), (0, 0)))

    grid = (b_pad // tile_b,)

    # Weights/biases: constant index_map -> VMEM-resident across grid steps.
    def resident(shape):
        return pl.BlockSpec(shape, lambda i: tuple(0 for _ in shape))

    out = pl.pallas_call(
        nash_dqn_kernel,
        out_shape=jax.ShapeDtypeStruct((b_pad, action_size), jnp.float32),
        grid=grid,
        in_specs=[
            pl.BlockSpec((tile_b, state_size), lambda i: (i, 0)),
            resident(w1.shape), resident(b1.shape),
            resident(w2.shape), resident(b2.shape),
            resident(w3.shape), resident(b3.shape),
        ],
        out_specs=pl.BlockSpec((tile_b, action_size), lambda i: (i, 0)),
        compiler_params=pltpu.CompilerParams(
            # Independent batch tiles -> shard across v7x's 2 TensorCores.
            dimension_semantics=("parallel",),
        ),
    )(x_in, w1, b1, w2, b2, w3, b3)

    # Drop batch padding only if we added any (cheap: output is 4 lanes wide).
    return out if b_pad == B else out[:B]


def init_params(key, state_size, action_size):
    # Deterministic init mirroring PyTorch Linear's U(-1/sqrt(fan_in), 1/sqrt(fan_in)).
    ks = jax.random.split(key, 6)

    def linear(kw, kb, fan_in, fan_out):
        bound = 1.0 / jnp.sqrt(jnp.float32(fan_in))
        w = jax.random.uniform(kw, (fan_in, fan_out), jnp.float32, -bound, bound)
        b = jax.random.uniform(kb, (1, fan_out), jnp.float32, -bound, bound)
        return w, b

    w1, b1 = linear(ks[0], ks[1], state_size, HIDDEN)
    w2, b2 = linear(ks[2], ks[3], HIDDEN, HIDDEN)
    w3, b3 = linear(ks[4], ks[5], HIDDEN, action_size)
    return (w1, b1, w2, b2, w3, b3)


def ref_forward_bf16(x, params):
    # Same math as the kernel: bf16 matmul operands, f32 accumulation/epilogue.
    w1, b1, w2, b2, w3, b3 = params
    h1 = jnp.dot(x.astype(jnp.bfloat16), w1.astype(jnp.bfloat16),
                 preferred_element_type=jnp.float32)
    h1 = jnp.maximum(h1 + b1, 0.0)
    h2 = jnp.dot(h1.astype(jnp.bfloat16), w2.astype(jnp.bfloat16),
                 preferred_element_type=jnp.float32)
    h2 = jnp.maximum(h2 + b2, 0.0)
    out = jnp.dot(h2.astype(jnp.bfloat16), w3.astype(jnp.bfloat16),
                  preferred_element_type=jnp.float32)
    return out + b3


def ref_forward_f32(x, params):
    # Full-precision reference (PyTorch-equivalent math) for parity sanity check.
    w1, b1, w2, b2, w3, b3 = params
    h1 = jnp.maximum(x @ w1 + b1, 0.0)
    h2 = jnp.maximum(h1 @ w2 + b2, 0.0)
    return h2 @ w3 + b3


if __name__ == "__main__":
    key = jax.random.PRNGKey(0)
    kp, kx1, kx2 = jax.random.split(key, 3)

    params = init_params(kp, STATE_SIZE, ACTION_SIZE)
    prepared = prepare_params(params)          # one-time weight prep (cached)
    fwd = jax.jit(nash_dqn_forward)            # pad + pallas_call + slice fused

    # Small single-tile case (batch=8).
    x_small = jax.random.normal(kx1, (8, STATE_SIZE), jnp.float32)
    out_small = jax.block_until_ready(fwd(x_small, prepared))
    assert out_small.shape == (8, ACTION_SIZE)
    assert jnp.allclose(out_small, ref_forward_bf16(x_small, params),
                        atol=1e-4, rtol=1e-4)
    assert jnp.allclose(out_small, ref_forward_f32(x_small, params),
                        atol=1e-1, rtol=1e-1)

    # Multi-tile case (batch=300 -> tile_b=160, 2 grid steps), exercises the
    # batch grid, resident weights, and row-padding slice-off.
    x_big = jax.random.normal(kx2, (300, STATE_SIZE), jnp.float32)
    out_big = jax.block_until_ready(fwd(x_big, prepared))
    assert out_big.shape == (300, ACTION_SIZE)
    assert jnp.allclose(out_big, ref_forward_bf16(x_big, params),
                        atol=1e-4, rtol=1e-4)
    assert jnp.allclose(out_big, ref_forward_f32(x_big, params),
                        atol=1e-1, rtol=1e-1)

    print("KERNEL_OK")
</pallas_src>

<mosaic_0001>
module attributes {stable_mosaic.version = 11 : i64} {
  func.func @nash_dqn_kernel(%arg0: i32, %arg1: memref<16x16xf32, #tpu.memory_space<vmem>>, %arg2: memref<16x128xbf16, #tpu.memory_space<vmem>>, %arg3: memref<1x128xf32, #tpu.memory_space<vmem>>, %arg4: memref<128x128xbf16, #tpu.memory_space<vmem>>, %arg5: memref<1x128xf32, #tpu.memory_space<vmem>>, %arg6: memref<128x4xbf16, #tpu.memory_space<vmem>>, %arg7: memref<1x4xf32, #tpu.memory_space<vmem>>, %arg8: memref<16x4xf32, #tpu.memory_space<vmem>>) attributes {dimension_semantics = [#tpu.dimension_semantics<parallel>], iteration_bounds = array<i64: 1>, scalar_prefetch = 0 : i64, scratch_operands = 0 : i64, tpu.core_type = #tpu.core_type<tc>, window_params = [{transform_indices = @transform_0, window_bounds = array<i64: 16, 16>}, {pipeline_mode = #tpu.pipeline_mode<synchronous>, transform_indices = @transform_1, window_bounds = array<i64: 16, 128>}, {pipeline_mode = #tpu.pipeline_mode<synchronous>, transform_indices = @transform_2, window_bounds = array<i64: 1, 128>}, {pipeline_mode = #tpu.pipeline_mode<synchronous>, transform_indices = @transform_3, window_bounds = array<i64: 128, 128>}, {pipeline_mode = #tpu.pipeline_mode<synchronous>, transform_indices = @transform_4, window_bounds = array<i64: 1, 128>}, {pipeline_mode = #tpu.pipeline_mode<synchronous>, transform_indices = @transform_5, window_bounds = array<i64: 128, 4>}, {pipeline_mode = #tpu.pipeline_mode<synchronous>, transform_indices = @transform_6, window_bounds = array<i64: 1, 4>}, {transform_indices = @transform_7, window_bounds = array<i64: 16, 4>}]} {
    %c0 = arith.constant 0 : index
    %c0_0 = arith.constant 0 : index
    %0 = vector.load %arg1[%c0, %c0_0] : memref<16x16xf32, #tpu.memory_space<vmem>>, vector<16x16xf32>
    %1 = arith.truncf %0 : vector<16x16xf32> to vector<16x16xbf16>
    %c0_1 = arith.constant 0 : index
    %c0_2 = arith.constant 0 : index
    %2 = vector.load %arg2[%c0_1, %c0_2] : memref<16x128xbf16, #tpu.memory_space<vmem>>, vector<16x128xbf16>
    %cst = arith.constant dense<0.000000e+00> : vector<16x128xf32>
    %3 = tpu.matmul %1, %2, %cst {dimension_numbers = #tpu.dot_dimension_numbers<[1], [0], [0], [1], [0, 0, 1, 1], [], []>} : vector<16x16xbf16>, vector<16x128xbf16>, vector<16x128xf32> -> vector<16x128xf32>
    %c0_3 = arith.constant 0 : index
    %c0_4 = arith.constant 0 : index
    %4 = vector.load %arg3[%c0_3, %c0_4] : memref<1x128xf32, #tpu.memory_space<vmem>>, vector<1x128xf32>
    %5 = vector.broadcast %4 : vector<1x128xf32> to vector<16x128xf32>
    %6 = arith.addf %3, %5 : vector<16x128xf32>
    %cst_5 = arith.constant 0.000000e+00 : f32
    %7 = vector.broadcast %cst_5 : f32 to vector<16x128xf32>
    %8 = arith.maximumf %6, %7 : vector<16x128xf32>
    %9 = arith.truncf %8 : vector<16x128xf32> to vector<16x128xbf16>
    %c0_6 = arith.constant 0 : index
    %c0_7 = arith.constant 0 : index
    %10 = vector.load %arg4[%c0_6, %c0_7] : memref<128x128xbf16, #tpu.memory_space<vmem>>, vector<128x128xbf16>
    %cst_8 = arith.constant dense<0.000000e+00> : vector<16x128xf32>
    %11 = tpu.matmul %9, %10, %cst_8 {dimension_numbers = #tpu.dot_dimension_numbers<[1], [0], [0], [1], [0, 0, 1, 1], [], []>} : vector<16x128xbf16>, vector<128x128xbf16>, vector<16x128xf32> -> vector<16x128xf32>
    %c0_9 = arith.constant 0 : index
    %c0_10 = arith.constant 0 : index
    %12 = vector.load %arg5[%c0_9, %c0_10] : memref<1x128xf32, #tpu.memory_space<vmem>>, vector<1x128xf32>
    %13 = vector.broadcast %12 : vector<1x128xf32> to vector<16x128xf32>
    %14 = arith.addf %11, %13 : vector<16x128xf32>
    %cst_11 = arith.constant 0.000000e+00 : f32
    %15 = vector.broadcast %cst_11 : f32 to vector<16x128xf32>
    %16 = arith.maximumf %14, %15 : vector<16x128xf32>
    %17 = arith.truncf %16 : vector<16x128xf32> to vector<16x128xbf16>
    %c0_12 = arith.constant 0 : index
    %c0_13 = arith.constant 0 : index
    %18 = vector.load %arg6[%c0_12, %c0_13] : memref<128x4xbf16, #tpu.memory_space<vmem>>, vector<128x4xbf16>
    %cst_14 = arith.constant dense<0.000000e+00> : vector<16x4xf32>
    %19 = tpu.matmul %17, %18, %cst_14 {dimension_numbers = #tpu.dot_dimension_numbers<[1], [0], [0], [1], [0, 0, 1, 1], [], []>} : vector<16x128xbf16>, vector<128x4xbf16>, vector<16x4xf32> -> vector<16x4xf32>
    %c0_15 = arith.constant 0 : index
    %c0_16 = arith.constant 0 : index
    %20 = vector.load %arg7[%c0_15, %c0_16] : memref<1x4xf32, #tpu.memory_space<vmem>>, vector<1x4xf32>
    %21 = vector.broadcast %20 : vector<1x4xf32> to vector<16x4xf32>
    %22 = arith.addf %19, %21 : vector<16x4xf32>
    %c0_17 = arith.constant 0 : index
    %c0_18 = arith.constant 0 : index
    %23 = vector.load %arg8[%c0_17, %c0_18] : memref<16x4xf32, #tpu.memory_space<vmem>>, vector<16x4xf32>
    tpu.vector_store %arg8[%c0_17, %c0_18], %22 {strides = array<i32>} : memref<16x4xf32, #tpu.memory_space<vmem>>, vector<16x4xf32>,
    return
  }
  func.func @transform_0(%arg0: i32) -> (i32, i32) {
    %c0_i32 = arith.constant 0 : i32
    %c0_i32_0 = arith.constant 0 : i32
    return %arg0, %c0_i32 : i32, i32
  }
  func.func @transform_1(%arg0: i32) -> (i32, i32) {
    %c0_i32 = arith.constant 0 : i32
    %c0_i32_0 = arith.constant 0 : i32
    %c0_i32_1 = arith.constant 0 : i32
    return %c0_i32, %c0_i32_0 : i32, i32
  }
  func.func @transform_2(%arg0: i32) -> (i32, i32) {
    %c0_i32 = arith.constant 0 : i32
    %c0_i32_0 = arith.constant 0 : i32
    %c0_i32_1 = arith.constant 0 : i32
    return %c0_i32, %c0_i32_0 : i32, i32
  }
  func.func @transform_3(%arg0: i32) -> (i32, i32) {
    %c0_i32 = arith.constant 0 : i32
    %c0_i32_0 = arith.constant 0 : i32
    %c0_i32_1 = arith.constant 0 : i32
    return %c0_i32, %c0_i32_0 : i32, i32
  }
  func.func @transform_4(%arg0: i32) -> (i32, i32) {
    %c0_i32 = arith.constant 0 : i32
    %c0_i32_0 = arith.constant 0 : i32
    %c0_i32_1 = arith.constant 0 : i32
    return %c0_i32, %c0_i32_0 : i32, i32
  }
  func.func @transform_5(%arg0: i32) -> (i32, i32) {
    %c0_i32 = arith.constant 0 : i32
    %c0_i32_0 = arith.constant 0 : i32
    %c0_i32_1 = arith.constant 0 : i32
    return %c0_i32, %c0_i32_0 : i32, i32
  }
  func.func @transform_6(%arg0: i32) -> (i32, i32) {
    %c0_i32 = arith.constant 0 : i32
    %c0_i32_0 = arith.constant 0 : i32
    %c0_i32_1 = arith.constant 0 : i32
    return %c0_i32, %c0_i32_0 : i32, i32
  }
  func.func @transform_7(%arg0: i32) -> (i32, i32) {
    %c0_i32 = arith.constant 0 : i32
    %c0_i32_0 = arith.constant 0 : i32
    return %arg0, %c0_i32 : i32, i32
  }
}

</mosaic_0001>

<bundles_post_ra>
// kernel: nash_dqn_forward.1
= control target key start
LH: loop header
LB: loop body
LE: loop exit
PB: predicated region body
PF: predicated region fallthrough
CT: control target
= control target key end

     0   :  { %vm42_vm0 = vcmask 130048   ;;  %vm230_vm1 = vcmask 31744   ;;  %s438_s1 = inlined_call_operand.vmem [shape: bf16[16,128], index: 1, kind: input, shape index: {}]   ;;  %s439_s0 = inlined_call_operand.vmem [shape: f32[16,16], index: 0, kind: input, shape index: {}]   ;;  %s440_s3 = inlined_call_operand.vmem [shape: bf16[128,128], index: 3, kind: input, shape index: {}]   ;;  %s441_s2 = inlined_call_operand.vmem [shape: f32[1,128], index: 2, kind: input, shape index: {}]   ;;  %s442_s4 = inlined_call_operand.vmem [shape: f32[1,128], index: 4, kind: input, shape index: {}]   ;;  %s443_s5 = inlined_call_operand.vmem [shape: bf16[128,4], index: 5, kind: input, shape index: {}]   ;;  %s444_s6 = inlined_call_operand.vmem [shape: f32[1,4], index: 6, kind: input, shape index: {}]   ;;  %s445_s7 = inlined_call_operand.vmem [shape: f32[16,4], index: 7, kind: output, shape index: {}]  }
   0x1   :  { %v306_v0 = vld [vmem:[%s438_s1] sm:$0xff]  ;;  %v28_v2 = vld [vmem:[%s439_s0 + $0x8] sm:$0xff]  ;;  %v314_v4 = vld [vmem:[%s440_s3 + $0x38] sm:$0xff] }
   0x2   :  { %v27_v1 = vld [vmem:[%s439_s0] sm:$0xff]  ;;  %53 = vmatpush.bf16.msra.mxu0 %v306_v0  ;;  %131 = vmatpush.bf16.msra.mxu1 %v314_v4  ;;  %v313_v5 = vld [vmem:[%s440_s3 + $0x30] sm:$0xff]  ;;  %v312_v6 = vld [vmem:[%s440_s3 + $0x28] sm:$0xff] }
   0x3   :  { %v29_v3 = vpack.c.bf16 %v28_v2, %v27_v1  ;;  %v311_v7 = vld [vmem:[%s440_s3 + $0x20] sm:$0xff]  ;;  %v310_v8 = vld [vmem:[%s440_s3 + $0x18] sm:$0xff]  ;;  %v309_v9 = vld [vmem:[%s440_s3 + $0x10] sm:$0xff] }
   0x4   :  { %v308_v10 = vld [vmem:[%s440_s3 + $0x8] sm:$0xff]  ;;  %v307_v11 = vld [vmem:[%s440_s3] sm:$0xff]  ;;  %v322_v12 = vld [vmem:[%s443_s5 + $0x38] sm:$0xff] }
   0x5   :  { %241 = vmatmul.msk.bf16.vlgmr.msra.gmra.mxu0 %vm42_vm0, %v29_v3  ;;  %216 = vmatpush.bf16.msra.mxu2 %v322_v12  ;;  %v321_v13 = vld [vmem:[%s443_s5 + $0x30] sm:$0xff]  ;;  %v320_v14 = vld [vmem:[%s443_s5 + $0x28] sm:$0xff]  ;;  %v319_v15 = vld [vmem:[%s443_s5 + $0x20] sm:$0xff] }
   0x6   :  { %132 = vmatpush.bf16.msra.mxu1 %v313_v5  ;;  %v323_v17 = vld [vmem:[%s441_s2] ss:$0 sm:$0xff]  ;;  %v318_v24 = vld [vmem:[%s443_s5 + $0x18] sm:$0xff]  ;;  %v317_v25 = vld [vmem:[%s443_s5 + $0x10] sm:$0xff] }
   0x7   :  { %v316_v26 = vld [vmem:[%s443_s5 + $0x8] sm:$0xff]  ;;  %v315_v27 = vld [vmem:[%s443_s5] sm:$0xff] }
   0x8   :  { %v324_v29 = vld [vmem:[%s442_s4] ss:$0 sm:$0xff] }
   0x9   :  { %217 = vmatpush.bf16.msra.mxu2 %v321_v13  ;;  %v325_v36 = vld [vmem:[%s444_s6] ss:$0 sm:$0xff] }
   0xa   :  { %133 = vmatpush.bf16.msra.mxu1 %v312_v6 }
   0xd   :  { %218 = vmatpush.bf16.msra.mxu2 %v320_v14 }
   0xe   :  { %134 = vmatpush.bf16.msra.mxu1 %v311_v7 }
  0x11   :  { %219 = vmatpush.bf16.msra.mxu2 %v319_v15 }
  0x12   :  { %135 = vmatpush.bf16.msra.mxu1 %v310_v8 }
  0x15   :  { %220 = vmatpush.bf16.msra.mxu2 %v318_v24 }
  0x16   :  { %136 = vmatpush.bf16.msra.mxu1 %v309_v9 }
  0x19   :  { %221 = vmatpush.bf16.msra.mxu2 %v317_v25 }
  0x1a   :  { %137 = vmatpush.bf16.msra.mxu1 %v308_v10 }
  0x1d   :  { %222 = vmatpush.bf16.msra.mxu2 %v316_v26 }
  0x1e   :  { %138 = vmatpush.bf16.msra.mxu1 %v307_v11 }
  0x21   :  { %223 = vmatpush.bf16.msra.mxu2 %v315_v27 }
  0x82   :  { %v55_v16 = vpop.f32.mrf.mxu0 }
  0x83   :  { %v56_v18 = vadd.f32 %v323_v17, %v55_v16 }
  0x85   :  { %v60_v21 = vmax.f32 %v56_v18, 0.0 }
  0x8a   :  { %v57_v19 = vpop.f32.mrf.mxu0 }
  0x8b   :  { %v58_v20 = vadd.f32 %v323_v17, %v57_v19 }
  0x8d   :  { %v61_v22 = vmax.f32 %v58_v20, 0.0 }
  0x8f   :  { %v62_v23 = vpack.c.bf16 %v61_v22, %v60_v21 }
  0x91   :  { %139 = vmatmul.bf16.vlgmr.msra.gmra.mxu1 %v62_v23 }
 0x10e   :  { %v140_v28 = vpop.f32.mrf.mxu1 }
 0x10f   :  { %v141_v30 = vadd.f32 %v324_v29, %v140_v28 }
 0x111   :  { %v145_v33 = vmax.f32 %v141_v30, 0.0 }
 0x116   :  { %v142_v31 = vpop.f32.mrf.mxu1 }
 0x117   :  { %v143_v32 = vadd.f32 %v324_v29, %v142_v31 }
 0x119   :  { %v146_v34 = vmax.f32 %v143_v32, 0.0 }
 0x11b   :  { %v147_v35 = vpack.c.bf16 %v146_v34, %v145_v33 }
 0x11d   :  { %224 = vmatmul.bf16.vlgmr.msra.gmra.mxu2 %v147_v35 }
 0x1a0   :  { %v225_v37 = vpop.f32.mrf.mxu2 }
 0x1a1   :  { %v226_v38 = vadd.f32 %v325_v36, %v225_v37 }
 0x1a3   :  { %231 = vst.msk [vmem:[%s445_s7] sm:$0xff] %vm230_vm1, %v226_v38 }
 0x1a8   :  { %v227_v39 = vpop.f32.mrf.mxu2 }
 0x1a9   :  { %v228_v40 = vadd.f32 %v325_v36, %v227_v39 }
 0x1ab   :  { %232 = vst.msk [vmem:[%s445_s7 + $0x8] sm:$0xff] %vm230_vm1, %v228_v40 }

</bundles_post_ra>
